<compile_context>
chip_gen: v5e
topology: v5e:2x2
jax: 0.10.0
libtpu: 0.0.40
codegen_flags: <defaults>
</compile_context>

<pallas_src>
import functools

import jax
import jax.numpy as jnp
import numpy as np
from jax.experimental import pallas as pl
from jax.experimental.pallas import tpu as pltpu


_HALF_DTYPES = (jnp.dtype(jnp.float16), jnp.dtype(jnp.bfloat16))


def _is_half(dt) -> bool:
    return jnp.dtype(dt) in _HALF_DTYPES


def _round_up(x: int, m: int) -> int:
    return ((x + m - 1) // m) * m


def _chip_info():
    """Returns (vmem_capacity_bytes_per_TC, tensorcores_per_chip, has_native_bf16_vpu)."""
    kind = ""
    try:
        kind = jax.devices()[0].device_kind.lower()
    except Exception:
        pass
    is_v7 = "v7" in kind
    is_v6 = "v6" in kind

    vmem = None
    try:
        vmem = int(pltpu.get_tpu_info().vmem_capacity_bytes)
    except Exception:
        vmem = None
    if vmem is None:
        vmem = (64 << 20) if is_v7 else (128 << 20)
    if is_v7:
        # get_tpu_info may report a per-chip number (2 TCs); VMEM scratchpad
        # is 64 MiB per TensorCore on v7x -> clamp so tiling is deterministic.
        vmem = min(vmem, 64 << 20)

    num_tc = 2 if is_v7 else 1
    # bf16 VALU is native on v6e/v7x; on v5e (and older) keep the f32 path.
    bf16_vpu = is_v6 or is_v7
    return vmem, num_tc, bf16_vpu


def _pick_tile_m(M: int, H: int, in_bytes: int, out_bytes: int,
                 vmem_cap: int, num_tc: int) -> int:
    """Largest multiple-of-8 row tile whose footprint fits VMEM (+ traffic cap)."""
    budget = int(vmem_cap * 0.55)                 # headroom for compiler scratch
    # Double-buffered input + output DMA slabs, plus ~2 (tile_m, H) f32
    # in-kernel temporaries (the f32 upcast `xf` and the normalized value;
    # the row reduction forces a second pass over the tile, so Mosaic may
    # materialize both).
    per_row = 2 * H * (in_bytes + out_bytes) + 8 * H
    cand = max(8, (budget // max(per_row, 1)) // 8 * 8)

    # Byte-based cap: target ~16 MiB of in+out HBM traffic per grid step so
    # the ~0.35us fixed per-step overhead stays negligible even for small H.
    traffic_per_row = H * (in_bytes + out_bytes)
    byte_cap = max(8, ((16 << 20) // max(traffic_per_row, 1)) // 8 * 8)
    cand = min(cand, byte_cap)

    cand = min(cand, _round_up(M, 8))             # never larger than (padded) M

    if num_tc >= 2 and M >= 16:
        # Megacore (v7x): keep an even, balanced step count on the parallel
        # row axis so neither TensorCore idles a full tile.
        steps = pl.cdiv(M, cand)
        steps = max(2, _round_up(steps, 2))
        cand = min(cand, max(8, _round_up(pl.cdiv(M, steps), 8)))
    return int(cand)


def _rms_norm_kernel(x_ref, w_ref, o_ref, *, eps, inv_h, cast_to_dtype, mul_in_half):
    # x_ref: (TILE_M, H), w_ref: (1, H) pre-prepped weight, o_ref: (TILE_M, H)
    xf = x_ref[...].astype(jnp.float32)
    # variance in f32 (matches .to(torch.float32).pow(2).mean(...)); multiply
    # by a precomputed 1/H instead of jnp.mean's per-row divide.
    variance = jnp.sum(xf * xf, axis=-1, keepdims=True) * inv_h       # (TILE_M, 1)
    xn = xf * jax.lax.rsqrt(variance + eps)                           # f32

    if cast_to_dtype is not None:
        # torch casts the normalized value to the half weight dtype *before*
        # the scale.
        xn = xn.astype(cast_to_dtype)
        if not mul_in_half:
            # v5e / fp16 path: do the multiply in f32 (no emulated half VALU),
            # with a single rounding at the store.
            xn = xn.astype(jnp.float32)

    # Weight already carries the (1 + w) offset / f32 cast (hoisted to wrapper).
    o_ref[...] = (w_ref[...] * xn).astype(o_ref.dtype)


def rms_norm(x, weight, eps=1e-5, add_unit_offset=False):
    """Pallas RMSNorm over the trailing dims given by weight.shape."""
    normalized_shape = tuple(weight.shape)
    n_norm = int(np.prod(normalized_shape))
    orig_shape = x.shape
    lead = orig_shape[: len(orig_shape) - len(normalized_shape)]
    assert tuple(orig_shape[len(lead):]) == normalized_shape

    M = int(np.prod(lead)) if lead else 1
    H = n_norm
    x2 = x.reshape(M, H)

    vmem_cap, num_tc, bf16_vpu = _chip_info()

    weight_is_half = _is_half(weight.dtype)
    # Output dtype follows the PyTorch promotion: half if weight is half,
    # else f32 (input * f32 rsqrt promotes to f32).
    out_dtype = weight.dtype if weight_is_half else jnp.promote_types(x.dtype, jnp.float32)

    # --- hoisted weight prep (done once, outside the grid loop) ---
    w_prep = weight.reshape(1, H)
    if add_unit_offset:
        w_prep = 1.0 + w_prep                      # stays in weight dtype (as torch)
    mul_in_half = (
        weight_is_half
        and jnp.dtype(weight.dtype) == jnp.dtype(jnp.bfloat16)
        and bf16_vpu
    )
    if weight_is_half and not mul_in_half:
        w_mul = w_prep.astype(jnp.float32)         # f32 multiply path (v5e / fp16)
    else:
        w_mul = w_prep                             # bf16-native or f32 weight
    cast_to_dtype = jnp.dtype(weight.dtype) if weight_is_half else None

    in_bytes = jnp.dtype(x.dtype).itemsize
    out_bytes = jnp.dtype(out_dtype).itemsize
    tile_m = _pick_tile_m(M, H, in_bytes, out_bytes, vmem_cap, num_tc)
    grid = (pl.cdiv(M, tile_m),)

    # Size the scoped VMEM limit to the chosen tile: double-buffered in/out
    # slabs + in-kernel f32 temporaries + padded weight tile, plus slack,
    # bounded below physical capacity.
    w_tile_bytes = 8 * _round_up(H, 128) * max(jnp.dtype(w_mul.dtype).itemsize, 4)
    vmem_need = (2 * tile_m * H * (in_bytes + out_bytes)
                 + 2 * tile_m * H * 4
                 + 2 * w_tile_bytes)
    vmem_limit = int(min(vmem_cap * 0.8, max(vmem_need + (8 << 20), 32 << 20)))

    # TODO(synk): for H < 128 the stores are masked (vst.msk); a lane-dense
    # repack (several rows per lane row) would help, but production H >= 1024
    # makes it irrelevant, so it is not done here.
    out = pl.pallas_call(
        functools.partial(
            _rms_norm_kernel,
            eps=float(eps),
            inv_h=float(1.0 / H),
            cast_to_dtype=cast_to_dtype,
            mul_in_half=bool(mul_in_half),
        ),
        out_shape=jax.ShapeDtypeStruct((M, H), out_dtype),
        grid_spec=pltpu.PrefetchScalarGridSpec(
            num_scalar_prefetch=0,
            grid=grid,
            in_specs=[
                pl.BlockSpec((tile_m, H), lambda i: (i, 0)),
                pl.BlockSpec((1, H), lambda i: (0, 0)),
            ],
            out_specs=pl.BlockSpec((tile_m, H), lambda i: (i, 0)),
        ),
        compiler_params=pltpu.CompilerParams(
            dimension_semantics=("parallel",),
            vmem_limit_bytes=vmem_limit,
        ),
    )(x2, w_mul)
    return out.reshape(lead + normalized_shape)


def _rms_norm_ref(x, weight, eps, add_unit_offset):
    """Pure-JAX reference mirroring manual_rms_norm."""
    dims = tuple(range(-1, -weight.ndim - 1, -1))
    variance = jnp.mean(x.astype(jnp.float32) ** 2, axis=dims, keepdims=True)
    xn = x.astype(jnp.float32) * jax.lax.rsqrt(variance + eps)
    if _is_half(weight.dtype):
        xn = xn.astype(weight.dtype)
    if add_unit_offset:
        return (1.0 + weight) * xn
    return weight * xn


if __name__ == "__main__":
    key = jax.random.PRNGKey(0)
    k1, k2, k3 = jax.random.split(key, 3)
    batch, seq, hidden = 2, 8, 32
    eps = 1e-5

    # --- f32, add_unit_offset=False (reset_parameters -> weight = ones) ---
    x = jax.random.normal(k1, (batch, seq, hidden), dtype=jnp.float32)
    weight = jnp.ones((hidden,), dtype=jnp.float32)
    out = jax.block_until_ready(rms_norm(x, weight, eps=eps, add_unit_offset=False))
    ref = _rms_norm_ref(x, weight, eps, False)
    np.testing.assert_allclose(np.asarray(out), np.asarray(ref), rtol=1e-5, atol=1e-5)

    # --- f32, add_unit_offset=True (reset_parameters -> weight = zeros) ---
    weight0 = jnp.zeros((hidden,), dtype=jnp.float32)
    out2 = jax.block_until_ready(rms_norm(x, weight0, eps=eps, add_unit_offset=True))
    ref2 = _rms_norm_ref(x, weight0, eps, True)
    np.testing.assert_allclose(np.asarray(out2), np.asarray(ref2), rtol=1e-5, atol=1e-5)

    # --- ragged row count (exercises cdiv grid / masked last tile) ---
    x3 = jax.random.normal(k2, (3, 5, hidden), dtype=jnp.float32)
    out3 = jax.block_until_ready(rms_norm(x3, weight, eps=eps, add_unit_offset=False))
    ref3 = _rms_norm_ref(x3, weight, eps, False)
    np.testing.assert_allclose(np.asarray(out3), np.asarray(ref3), rtol=1e-5, atol=1e-5)

    # --- bf16 input + bf16 weight (half-precision cast-before-scale path) ---
    xb = jax.random.normal(k3, (batch, seq, hidden), dtype=jnp.float32).astype(jnp.bfloat16)
    wb = jnp.ones((hidden,), dtype=jnp.bfloat16)
    out4 = jax.block_until_ready(rms_norm(xb, wb, eps=eps, add_unit_offset=False))
    ref4 = _rms_norm_ref(xb, wb, eps, False)
    assert out4.dtype == jnp.bfloat16
    np.testing.assert_allclose(
        np.asarray(out4, dtype=np.float32), np.asarray(ref4, dtype=np.float32),
        rtol=2e-2, atol=2e-2)

    print("KERNEL_OK")
</pallas_src>

<mosaic_0001>
module attributes {stable_mosaic.version = 11 : i64} {
  func.func @_rms_norm_kernel(%arg0: i32, %arg1: memref<16x32xf32, #tpu.memory_space<vmem>>, %arg2: memref<1x32xf32, #tpu.memory_space<vmem>>, %arg3: memref<16x32xf32, #tpu.memory_space<vmem>>) attributes {dimension_semantics = [#tpu.dimension_semantics<parallel>], iteration_bounds = array<i64: 1>, scalar_prefetch = 0 : i64, scratch_operands = 0 : i64, tpu.core_type = #tpu.core_type<tc>, window_params = [{transform_indices = @transform_0, window_bounds = array<i64: 16, 32>}, {pipeline_mode = #tpu.pipeline_mode<synchronous>, transform_indices = @transform_1, window_bounds = array<i64: 1, 32>}, {transform_indices = @transform_2, window_bounds = array<i64: 16, 32>}]} {
    %c0 = arith.constant 0 : index
    %c0_0 = arith.constant 0 : index
    %0 = vector.load %arg1[%c0, %c0_0] : memref<16x32xf32, #tpu.memory_space<vmem>>, vector<16x32xf32>
    %1 = arith.mulf %0, %0 : vector<16x32xf32>
    %cst = arith.constant dense<0.000000e+00> : vector<16xf32>
    %2 = vector.multi_reduction <add>, %1, %cst [1] : vector<16x32xf32> to vector<16xf32>
    %3 = vector.shape_cast %2 : vector<16xf32> to vector<16x1xf32>
    %cst_1 = arith.constant 3.125000e-02 : f32
    %4 = vector.broadcast %cst_1 : f32 to vector<16x1xf32>
    %5 = arith.mulf %3, %4 : vector<16x1xf32>
    %cst_2 = arith.constant 9.99999974E-6 : f32
    %6 = vector.broadcast %cst_2 : f32 to vector<16x1xf32>
    %7 = arith.addf %5, %6 : vector<16x1xf32>
    %8 = math.rsqrt %7 : vector<16x1xf32>
    %9 = vector.broadcast %8 : vector<16x1xf32> to vector<16x32xf32>
    %10 = arith.mulf %0, %9 : vector<16x32xf32>
    %c0_3 = arith.constant 0 : index
    %c0_4 = arith.constant 0 : index
    %11 = vector.load %arg2[%c0_3, %c0_4] : memref<1x32xf32, #tpu.memory_space<vmem>>, vector<1x32xf32>
    %12 = vector.broadcast %11 : vector<1x32xf32> to vector<16x32xf32>
    %13 = arith.mulf %12, %10 : vector<16x32xf32>
    %c0_5 = arith.constant 0 : index
    %c0_6 = arith.constant 0 : index
    %14 = vector.load %arg3[%c0_5, %c0_6] : memref<16x32xf32, #tpu.memory_space<vmem>>, vector<16x32xf32>
    tpu.vector_store %arg3[%c0_5, %c0_6], %13 {strides = array<i32>} : memref<16x32xf32, #tpu.memory_space<vmem>>, vector<16x32xf32>,
    return
  }
  func.func @transform_0(%arg0: i32) -> (i32, i32) {
    %c0_i32 = arith.constant 0 : i32
    %c0_i32_0 = arith.constant 0 : i32
    return %arg0, %c0_i32 : i32, i32
  }
  func.func @transform_1(%arg0: i32) -> (i32, i32) {
    %c0_i32 = arith.constant 0 : i32
    %c0_i32_0 = arith.constant 0 : i32
    %c0_i32_1 = arith.constant 0 : i32
    return %c0_i32, %c0_i32_0 : i32, i32
  }
  func.func @transform_2(%arg0: i32) -> (i32, i32) {
    %c0_i32 = arith.constant 0 : i32
    %c0_i32_0 = arith.constant 0 : i32
    return %arg0, %c0_i32 : i32, i32
  }
}

</mosaic_0001>

<bundles_post_ra>
// kernel: tpu_custom_call.1
= control target key start
LH: loop header
LB: loop body
LE: loop exit
PB: predicated region body
PF: predicated region fallthrough
CT: control target
= control target key end

     0   :  { %7 = vsyncpa [#allocation3], 0  ;;  %s234_s0 = inlined_call_operand.hbm [shape: f32[16,32], index: 0, kind: input, shape index: {}]   ;;  %s235_s1 = inlined_call_operand.hbm [shape: f32[1,32], index: 1, kind: input, shape index: {}]   ;;  %s236_s2 = inlined_call_operand.hbm [shape: f32[16,32], index: 2, kind: output, shape index: {}]  }
   0x1   :  { %8 = vsyncpa [#allocation6], 0 }
   0x2   :  { %9 = vsyncpa [#allocation4], 0  ;;  %s14_s11 = sshll.u32 %s234_s0, 4  ;;  %s195_s12 = smov [#allocation2]   ;;  %s15_s11 = int_to_ptr.hbm [resolvable:$true] %s14_s11 }
   0x3   :  { %s16_s13 = sshll.u32 %s195_s12, 4  ;;  %s28_s16 = sshll.u32 %s235_s1, 4  ;;  %s17_s13 = int_to_ptr.vmem [resolvable:$true] %s16_s13  ;;  %s29_s16 = int_to_ptr.hbm [resolvable:$true] %s28_s16 }
   0x4   :  { %s196_s17 = smov 128   ;;  %s197_s18 = smov 8  }
   0x5   :  { %22 = dma.hbm_to_vmem [thread:$0]  %s15_s11, 256, %s17_s13, [#allocation3], %s196_s17, %s196_s17, %s197_s18  }
   0x6   :  { %s198_s19 = smov [#allocation5]  }
   0x7   :  { %s30_s20 = sshll.u32 %s198_s19, 4  ;;  %s31_s20 = int_to_ptr.vmem [resolvable:$true] %s30_s20 }
   0x8   :  { %33 = dma.hbm_to_vmem [thread:$0]  %s29_s16, 16, %s31_s20, [#allocation6]  }
   0x9   :  { %189 = dma.done.wait [#allocation3], 256  }
   0xa   :  { %190 = vsyncadd [#allocation3], 4294967040 }
   0xb   :  { %191 = dma.done.wait [#allocation6], 16  }
   0xc   :  { %192 = vsyncadd [#allocation6], 4294967280  ;;  %v42_v0 = vld [vmem:[#allocation2] sm:$0xff]  ;;  %vm46_vm0 = vcmask 261120   ;;  %v43_v2 = vld [vmem:[#allocation2 + $0x8] sm:$0xff]  ;;  %s199_s0 = smov [#allocation7]  }
   0xd   :  { %v44_v1 = vmul.f32 %v42_v0, %v42_v0  ;;  %v45_v4 = vmul.f32 %v43_v2, %v43_v2  ;;  %v112_v20 = vld [vmem:[#allocation5] ss:$0 sm:$0xff]  ;;  %s91_s1 = sshll.u32 %s199_s0, 4  ;;  %s93_s23 = sshll.u32 %s236_s2, 4  ;;  %s92_s1 = int_to_ptr.vmem [resolvable:$true] %s91_s1  ;;  %s94_s23 = int_to_ptr.hbm [resolvable:$true] %s93_s23 }
   0xf   :  { %v47_v3 = vsel %vm46_vm0, %v44_v1, 0.0  ;;  %v50_v5 = vsel %vm46_vm0, %v45_v4, 0.0 }
  0x10   :  { %48 = vadd.xlane.f32.xlu0 %v47_v3 }
  0x18   :  { %51 = vadd.xlane.f32.xlu0 %v50_v5 }
  0x83   :  { %v49_v6 = vpop.xlane.xlu0 %48 }
  0x84   :  { %v53_v7 = vmul.f32 0.03125, %v49_v6 }
  0x86   :  { %v55_v8 = vadd.f32 1e-05, %v53_v7 }
  0x88   :  { %113 = vrsqrt.f32 %v55_v8  ;;  %vm63_vm2 = vweird.f32 %v55_v8 }
  0x8b   :  { %v52_v9 = vpop.xlane.xlu0 %51 }
  0x8c   :  { %v54_v10 = vmul.f32 0.03125, %v52_v9 }
  0x8e   :  { %v114_v11 = vpop.eup %113  ;;  %v56_v12 = vadd.f32 1e-05, %v54_v10 }
  0x8f   :  { %v58_v13 = vmul.f32 %v114_v11, %v55_v8  ;;  %vm64_vm1 = vweird.f32 %v114_v11 }
  0x90   :  { %115 = vrsqrt.f32 %v56_v12  ;;  %vm65_vm3 = vmor %vm63_vm2, %vm64_vm1  ;;  %vm73_vm5 = vweird.f32 %v56_v12 }
  0x91   :  { %v59_v14 = vmul.f32 %v114_v11, %v58_v13 }
  0x93   :  { %v60_v15 = vmul.f32 0.5, %v59_v14 }
  0x95   :  { %v61_v16 = vsub.f32 1.5, %v60_v15 }
  0x96   :  { %v116_v17 = vpop.eup %115 }
  0x97   :  { %v62_v18 = vmul.f32 %v114_v11, %v61_v16  ;;  %v68_v19 = vmul.f32 %v116_v17, %v56_v12  ;;  %vm74_vm4 = vweird.f32 %v116_v17 }
  0x98   :  { %vm75_vm6 = vmor %vm73_vm5, %vm74_vm4 }
  0x99   :  { %v66_v21 = vsel %vm65_vm3, %v114_v11, %v62_v18  ;;  %v69_v22 = vmul.f32 %v116_v17, %v68_v19 }
  0x9a   :  { %v77_v23 = vmul.f32 %v66_v21, %v42_v0 }
  0x9b   :  { %v70_v24 = vmul.f32 0.5, %v69_v22 }
  0x9c   :  { %v83_v25 = vmul.f32 %v112_v20, %v77_v23 }
  0x9d   :  { %v71_v26 = vsub.f32 1.5, %v70_v24 }
  0x9e   :  { %85 = vst.msk [vmem:[#allocation7] sm:$0xff] %vm46_vm0, %v83_v25 }
  0x9f   :  { %v72_v27 = vmul.f32 %v116_v17, %v71_v26 }
  0xa1   :  { %v76_v28 = vsel %vm75_vm6, %v116_v17, %v72_v27 }
  0xa2   :  { %v78_v29 = vmul.f32 %v76_v28, %v43_v2 }
  0xa4   :  { %v84_v30 = vmul.f32 %v112_v20, %v78_v29 }
  0xa6   :  { %86 = vst.msk [vmem:[#allocation7 + $0x8] sm:$0xff] %vm46_vm0, %v84_v30 }
  0xa7   :  { %99 = dma.vmem_to_hbm [thread:$0]  %s92_s1, 256, %s94_s23, [#allocation4], %s196_s17, %s196_s17, %s197_s18  }
  0xa8   :  { %193 = dma.done.wait [#allocation4], 256  }
  0xa9   :  { %194 = vsyncadd [#allocation4], 4294967040 }
  0xaa   :  { %104 = vsyncpa [#allocation3], 1 }
  0xab   :  { %105 = vsyncpa [#allocation6], 1 }
  0xac   :  { %106 = vsyncpa [#allocation4], 1 }

</bundles_post_ra>
